<compile_context>
chip_gen: v6e
topology: v6e:2x2x1
jax: 0.10.0
libtpu: 0.0.40
codegen_flags: <defaults>
</compile_context>

<pallas_src>
import jax
import jax.numpy as jnp
from jax.experimental import pallas as pl
from jax.experimental.pallas import tpu as pltpu
import numpy as np

T1 = 0.2
T2 = 2.0
LABEL_SMOOTHING = 0.1
NUM_ITERS = 5


def _pick_tile_cols(n, c, target_bytes=2 * 1024 * 1024):
    """Rows are on the 128-lane axis.  Pick the largest multiple-of-128 row tile
    with C*TB*4B <= ~2 MiB, but keep grid >= 2 when the batch allows it (v7x has
    two TensorCores)."""
    if n <= 128:
        return int(n)                                   # single full-extent block
    by_bytes = max(128, (target_bytes // (4 * c)) // 128 * 128)
    by_half = max(128, ((-(-n // 2) + 127) // 128) * 128)   # ceil(n/2) -> 128-mult
    return int(min(by_bytes, by_half))


def _make_kernel(n_total, num_classes, tile_cols):
    c = float(num_classes)
    hot = 1.0 - c / (c - 1.0) * LABEL_SMOOTHING + LABEL_SMOOTHING / (c - 1.0)
    cold = LABEL_SMOOTHING / (c - 1.0)

    one_m_t1 = 1.0 - T1            # 0.8
    two_m_t1 = 2.0 - T1            # 1.8
    inv_1m_t1 = 1.0 / one_m_t1
    inv_2m_t1 = 1.0 / two_m_t1

    # trace-time constants for the onehot-dependent terms
    lt_hot = ((hot + 1e-10) ** one_m_t1 - 1.0) * inv_1m_t1
    lt_cold = ((cold + 1e-10) ** one_m_t1 - 1.0) * inv_1m_t1
    pow_hot = hot ** two_m_t1
    pow_cold = cold ** two_m_t1

    k1 = hot * lt_hot + (c - 1.0) * cold * lt_cold   # sum_j onehot_j * log_t(onehot_j)
    k2 = pow_hot + (c - 1.0) * pow_cold              # sum_j onehot_j ** (2 - t1)

    def kernel(preds_ref, labels_ref, out_ref):
        i = pl.program_id(0)
        x = preds_ref[...].astype(jnp.float32)       # (C, TB), rows on lanes
        lab = labels_ref[...]                        # (1, TB) int32
        nc, tb = x.shape

        # --- tempered-softmax normalization, specialized for t2 == 2.0 --------
        #   exp_t(u, 2) = 1 / (1 - u)   (relu clamp is dead: a0 <= 0, lp >= 1)
        #   norm_const  = (lp - 1) + mu
        mu = jnp.max(x, axis=0, keepdims=True)       # (1, TB)
        a0 = x - mu
        na = a0
        for _ in range(NUM_ITERS):
            lp = jnp.sum(pl.reciprocal(1.0 - na, approx=True),
                         axis=0, keepdims=True)      # (1, TB)
            na = a0 * (1.0 / lp)                     # exact recip on narrow path
        lp = jnp.sum(1.0 / (1.0 - na), axis=0, keepdims=True)   # exact final lp
        norm_const = (lp - 1.0) + mu

        # --- epilogue from logd = log(d), d = 1 - (x - norm_const) >= 1 -------
        logd = jnp.log(1.0 - (x - norm_const))       # (C, TB)
        probs_p = jnp.exp(-one_m_t1 * logd)          # probs ** (1 - t1)
        probs_pow = jnp.exp(-two_m_t1 * logd)        # probs ** (2 - t1)

        class_ids = jax.lax.broadcasted_iota(jnp.int32, (nc, tb), 0)
        is_hot = class_ids == lab                    # (C, TB), label match per lane

        sum_p = jnp.sum(probs_p, axis=0, keepdims=True)                        # (1, TB)
        p_at_lab = jnp.sum(jnp.where(is_hot, probs_p, 0.0), axis=0, keepdims=True)
        sum_pow = jnp.sum(probs_pow, axis=0, keepdims=True)

        sum_logt = (sum_p - c) * inv_1m_t1           # sum_j log_t(probs_j, t1)
        logt_at_lab = (p_at_lab - 1.0) * inv_1m_t1   # log_t(probs_label, t1)

        row_loss = (k1
                    - cold * sum_logt
                    - (hot - cold) * logt_at_lab
                    - inv_2m_t1 * (k2 - sum_pow))    # (1, TB)

        # neutralize ragged-tail garbage lanes (select, never multiply)
        col_ids = i * tile_cols + jax.lax.broadcasted_iota(jnp.int32, (1, tb), 1)
        out_ref[...] = jnp.where(col_ids < n_total, row_loss, 0.0)

    return kernel


def bi_tempered_loss(preds, labels, tile_cols=None, reduction="mean"):
    """preds: [N, C] float (any float dtype); labels: [N] int class ids."""
    n, c = preds.shape
    if tile_cols is None:
        tile_cols = _pick_tile_cols(n, c)
    grid = (pl.cdiv(n, tile_cols),)

    # rows-on-lanes layout; for small C the lane-density gain inside the
    # compute-bound kernel dominates this one cheap relayout.
    preds_t = jnp.transpose(preds)                       # (C, N)
    labels2d = labels.reshape(1, n).astype(jnp.int32)    # (1, N)

    row_losses = pl.pallas_call(
        _make_kernel(n, c, tile_cols),
        out_shape=jax.ShapeDtypeStruct((1, n), jnp.float32),
        grid_spec=pltpu.PrefetchScalarGridSpec(
            num_scalar_prefetch=0,
            grid=grid,
            in_specs=[
                pl.BlockSpec((c, tile_cols), lambda i: (0, i)),
                pl.BlockSpec((1, tile_cols), lambda i: (0, i)),
            ],
            out_specs=pl.BlockSpec((1, tile_cols), lambda i: (0, i)),
        ),
        compiler_params=pltpu.CompilerParams(
            dimension_semantics=("parallel",),
            vmem_limit_bytes=32 * 1024 * 1024,
        ),
    )(preds_t, labels2d)

    if reduction == "mean":
        return jnp.sum(row_losses) / n
    if reduction == "sum":
        return jnp.sum(row_losses)
    return row_losses[0, :n]


# ---------------- pure-JAX reference (mirrors the PyTorch code) ----------------
def _ref_bi_tempered_loss(preds, labels):
    n, c = preds.shape
    onehot = jax.nn.one_hot(labels, c, dtype=jnp.float32)
    onehot = (1.0 - c / (c - 1.0) * LABEL_SMOOTHING) * onehot \
             + LABEL_SMOOTHING / (c - 1.0)

    def exp_t(u, t):
        return jnp.maximum(1.0 + (1.0 - t) * u, 0.0) ** (1.0 / (1.0 - t))

    def log_t(u, t):
        return (u ** (1.0 - t) - 1.0) / (1.0 - t)

    mu = jnp.max(preds, axis=-1, keepdims=True)
    a0 = preds - mu
    na = a0
    for _ in range(NUM_ITERS):
        lp = jnp.sum(exp_t(na, T2), axis=-1, keepdims=True)
        na = a0 * lp ** (1.0 - T2)
    lp = jnp.sum(exp_t(na, T2), axis=-1, keepdims=True)
    norm_const = -log_t(1.0 / lp, T2) + mu
    probs = exp_t(preds - norm_const, T2)
    temp1 = (log_t(onehot + 1e-10, T1) - log_t(probs, T1)) * onehot
    temp2 = (1.0 / (2.0 - T1)) * (onehot ** (2.0 - T1) - probs ** (2.0 - T1))
    return jnp.mean(jnp.sum(temp1 - temp2, axis=-1))


if __name__ == "__main__":
    key = jax.random.PRNGKey(0)
    kp, kl = jax.random.split(key)

    # small, module-consistent shapes: preds [N, C] logits, labels [N] class ids
    N, C = 8, 16
    preds = jax.random.normal(kp, (N, C), dtype=jnp.float32) * 2.0
    labels = jax.random.randint(kl, (N,), 0, C, dtype=jnp.int32)

    loss = jax.block_until_ready(bi_tempered_loss(preds, labels))
    ref = jax.block_until_ready(_ref_bi_tempered_loss(preds, labels))
    np.testing.assert_allclose(np.asarray(loss), np.asarray(ref),
                               rtol=2e-3, atol=2e-3)

    # ragged / multi-tile path: grid = 2, partial last block handled by masking
    N2, C2 = 200, 10
    kp2, kl2 = jax.random.split(kl)
    preds2 = jax.random.normal(kp2, (N2, C2), dtype=jnp.float32) * 3.0
    labels2 = jax.random.randint(kl2, (N2,), 0, C2, dtype=jnp.int32)
    loss2 = jax.block_until_ready(bi_tempered_loss(preds2, labels2))
    ref2 = jax.block_until_ready(_ref_bi_tempered_loss(preds2, labels2))
    np.testing.assert_allclose(np.asarray(loss2), np.asarray(ref2),
                               rtol=2e-3, atol=2e-3)

    print("KERNEL_OK")
</pallas_src>

<mosaic_0001>
module attributes {stable_mosaic.version = 11 : i64} {
  func.func @kernel(%arg0: i32, %arg1: memref<16x8xf32, #tpu.memory_space<vmem>>, %arg2: memref<1x8xi32, #tpu.memory_space<vmem>>, %arg3: memref<1x8xf32, #tpu.memory_space<vmem>>) attributes {dimension_semantics = [#tpu.dimension_semantics<parallel>], iteration_bounds = array<i64: 1>, scalar_prefetch = 0 : i64, scratch_operands = 0 : i64, tpu.core_type = #tpu.core_type<tc>, window_params = [{transform_indices = @transform_0, window_bounds = array<i64: 16, 8>}, {transform_indices = @transform_1, window_bounds = array<i64: 1, 8>}, {transform_indices = @transform_2, window_bounds = array<i64: 1, 8>}]} {
    %c0 = arith.constant 0 : index
    %c0_0 = arith.constant 0 : index
    %0 = vector.load %arg1[%c0, %c0_0] : memref<16x8xf32, #tpu.memory_space<vmem>>, vector<16x8xf32>
    %c0_1 = arith.constant 0 : index
    %c0_2 = arith.constant 0 : index
    %1 = vector.load %arg2[%c0_1, %c0_2] : memref<1x8xi32, #tpu.memory_space<vmem>>, vector<1x8xi32>
    %cst = arith.constant dense<0xFF800000> : vector<8xf32>
    %2 = vector.multi_reduction <maximumf>, %0, %cst [0] : vector<16x8xf32> to vector<8xf32>
    %3 = vector.shape_cast %2 : vector<8xf32> to vector<1x8xf32>
    %4 = vector.broadcast %3 : vector<1x8xf32> to vector<16x8xf32>
    %5 = arith.subf %0, %4 : vector<16x8xf32>
    %cst_3 = arith.constant 1.000000e+00 : f32
    %6 = vector.broadcast %cst_3 : f32 to vector<16x8xf32>
    %7 = arith.subf %6, %5 : vector<16x8xf32>
    %8 = tpu.reciprocal %7 {approx = true} : vector<16x8xf32> -> vector<16x8xf32>
    %cst_4 = arith.constant dense<0.000000e+00> : vector<8xf32>
    %9 = vector.multi_reduction <add>, %8, %cst_4 [0] : vector<16x8xf32> to vector<8xf32>
    %10 = vector.shape_cast %9 : vector<8xf32> to vector<1x8xf32>
    %cst_5 = arith.constant 1.000000e+00 : f32
    %11 = vector.broadcast %cst_5 : f32 to vector<1x8xf32>
    %12 = arith.divf %11, %10 : vector<1x8xf32>
    %13 = vector.broadcast %12 : vector<1x8xf32> to vector<16x8xf32>
    %14 = arith.mulf %5, %13 : vector<16x8xf32>
    %cst_6 = arith.constant 1.000000e+00 : f32
    %15 = vector.broadcast %cst_6 : f32 to vector<16x8xf32>
    %16 = arith.subf %15, %14 : vector<16x8xf32>
    %17 = tpu.reciprocal %16 {approx = true} : vector<16x8xf32> -> vector<16x8xf32>
    %cst_7 = arith.constant dense<0.000000e+00> : vector<8xf32>
    %18 = vector.multi_reduction <add>, %17, %cst_7 [0] : vector<16x8xf32> to vector<8xf32>
    %19 = vector.shape_cast %18 : vector<8xf32> to vector<1x8xf32>
    %cst_8 = arith.constant 1.000000e+00 : f32
    %20 = vector.broadcast %cst_8 : f32 to vector<1x8xf32>
    %21 = arith.divf %20, %19 : vector<1x8xf32>
    %22 = vector.broadcast %21 : vector<1x8xf32> to vector<16x8xf32>
    %23 = arith.mulf %5, %22 : vector<16x8xf32>
    %cst_9 = arith.constant 1.000000e+00 : f32
    %24 = vector.broadcast %cst_9 : f32 to vector<16x8xf32>
    %25 = arith.subf %24, %23 : vector<16x8xf32>
    %26 = tpu.reciprocal %25 {approx = true} : vector<16x8xf32> -> vector<16x8xf32>
    %cst_10 = arith.constant dense<0.000000e+00> : vector<8xf32>
    %27 = vector.multi_reduction <add>, %26, %cst_10 [0] : vector<16x8xf32> to vector<8xf32>
    %28 = vector.shape_cast %27 : vector<8xf32> to vector<1x8xf32>
    %cst_11 = arith.constant 1.000000e+00 : f32
    %29 = vector.broadcast %cst_11 : f32 to vector<1x8xf32>
    %30 = arith.divf %29, %28 : vector<1x8xf32>
    %31 = vector.broadcast %30 : vector<1x8xf32> to vector<16x8xf32>
    %32 = arith.mulf %5, %31 : vector<16x8xf32>
    %cst_12 = arith.constant 1.000000e+00 : f32
    %33 = vector.broadcast %cst_12 : f32 to vector<16x8xf32>
    %34 = arith.subf %33, %32 : vector<16x8xf32>
    %35 = tpu.reciprocal %34 {approx = true} : vector<16x8xf32> -> vector<16x8xf32>
    %cst_13 = arith.constant dense<0.000000e+00> : vector<8xf32>
    %36 = vector.multi_reduction <add>, %35, %cst_13 [0] : vector<16x8xf32> to vector<8xf32>
    %37 = vector.shape_cast %36 : vector<8xf32> to vector<1x8xf32>
    %cst_14 = arith.constant 1.000000e+00 : f32
    %38 = vector.broadcast %cst_14 : f32 to vector<1x8xf32>
    %39 = arith.divf %38, %37 : vector<1x8xf32>
    %40 = vector.broadcast %39 : vector<1x8xf32> to vector<16x8xf32>
    %41 = arith.mulf %5, %40 : vector<16x8xf32>
    %cst_15 = arith.constant 1.000000e+00 : f32
    %42 = vector.broadcast %cst_15 : f32 to vector<16x8xf32>
    %43 = arith.subf %42, %41 : vector<16x8xf32>
    %44 = tpu.reciprocal %43 {approx = true} : vector<16x8xf32> -> vector<16x8xf32>
    %cst_16 = arith.constant dense<0.000000e+00> : vector<8xf32>
    %45 = vector.multi_reduction <add>, %44, %cst_16 [0] : vector<16x8xf32> to vector<8xf32>
    %46 = vector.shape_cast %45 : vector<8xf32> to vector<1x8xf32>
    %cst_17 = arith.constant 1.000000e+00 : f32
    %47 = vector.broadcast %cst_17 : f32 to vector<1x8xf32>
    %48 = arith.divf %47, %46 : vector<1x8xf32>
    %49 = vector.broadcast %48 : vector<1x8xf32> to vector<16x8xf32>
    %50 = arith.mulf %5, %49 : vector<16x8xf32>
    %cst_18 = arith.constant 1.000000e+00 : f32
    %51 = vector.broadcast %cst_18 : f32 to vector<16x8xf32>
    %52 = arith.subf %51, %50 : vector<16x8xf32>
    %cst_19 = arith.constant 1.000000e+00 : f32
    %53 = vector.broadcast %cst_19 : f32 to vector<16x8xf32>
    %54 = arith.divf %53, %52 : vector<16x8xf32>
    %cst_20 = arith.constant dense<0.000000e+00> : vector<8xf32>
    %55 = vector.multi_reduction <add>, %54, %cst_20 [0] : vector<16x8xf32> to vector<8xf32>
    %56 = vector.shape_cast %55 : vector<8xf32> to vector<1x8xf32>
    %cst_21 = arith.constant 1.000000e+00 : f32
    %57 = vector.broadcast %cst_21 : f32 to vector<1x8xf32>
    %58 = arith.subf %56, %57 : vector<1x8xf32>
    %59 = arith.addf %58, %3 : vector<1x8xf32>
    %60 = vector.broadcast %59 : vector<1x8xf32> to vector<16x8xf32>
    %61 = arith.subf %0, %60 : vector<16x8xf32>
    %cst_22 = arith.constant 1.000000e+00 : f32
    %62 = vector.broadcast %cst_22 : f32 to vector<16x8xf32>
    %63 = arith.subf %62, %61 : vector<16x8xf32>
    %64 = math.log %63 : vector<16x8xf32>
    %cst_23 = arith.constant -8.000000e-01 : f32
    %65 = vector.broadcast %cst_23 : f32 to vector<16x8xf32>
    %66 = arith.mulf %65, %64 : vector<16x8xf32>
    %67 = math.exp %66 : vector<16x8xf32>
    %cst_24 = arith.constant -1.800000e+00 : f32
    %68 = vector.broadcast %cst_24 : f32 to vector<16x8xf32>
    %69 = arith.mulf %68, %64 : vector<16x8xf32>
    %70 = math.exp %69 : vector<16x8xf32>
    %71 = tpu.iota {dimensions = array<i32: 0>} : vector<16x8xi32>
    %72 = vector.broadcast %1 : vector<1x8xi32> to vector<16x8xi32>
    %73 = arith.cmpi eq, %71, %72 : vector<16x8xi32>
    %cst_25 = arith.constant dense<0.000000e+00> : vector<8xf32>
    %74 = vector.multi_reduction <add>, %67, %cst_25 [0] : vector<16x8xf32> to vector<8xf32>
    %75 = vector.shape_cast %74 : vector<8xf32> to vector<1x8xf32>
    %cst_26 = arith.constant 0.000000e+00 : f32
    %76 = vector.broadcast %cst_26 : f32 to vector<16x8xf32>
    %77 = arith.select %73, %67, %76 : vector<16x8xi1>, vector<16x8xf32>
    %cst_27 = arith.constant dense<0.000000e+00> : vector<8xf32>
    %78 = vector.multi_reduction <add>, %77, %cst_27 [0] : vector<16x8xf32> to vector<8xf32>
    %79 = vector.shape_cast %78 : vector<8xf32> to vector<1x8xf32>
    %cst_28 = arith.constant dense<0.000000e+00> : vector<8xf32>
    %80 = vector.multi_reduction <add>, %70, %cst_28 [0] : vector<16x8xf32> to vector<8xf32>
    %81 = vector.shape_cast %80 : vector<8xf32> to vector<1x8xf32>
    %cst_29 = arith.constant 1.600000e+01 : f32
    %82 = vector.broadcast %cst_29 : f32 to vector<1x8xf32>
    %83 = arith.subf %75, %82 : vector<1x8xf32>
    %cst_30 = arith.constant 1.250000e+00 : f32
    %84 = vector.broadcast %cst_30 : f32 to vector<1x8xf32>
    %85 = arith.mulf %83, %84 : vector<1x8xf32>
    %cst_31 = arith.constant 1.000000e+00 : f32
    %86 = vector.broadcast %cst_31 : f32 to vector<1x8xf32>
    %87 = arith.subf %79, %86 : vector<1x8xf32>
    %cst_32 = arith.constant 1.250000e+00 : f32
    %88 = vector.broadcast %cst_32 : f32 to vector<1x8xf32>
    %89 = arith.mulf %87, %88 : vector<1x8xf32>
    %cst_33 = arith.constant 0.00666666683 : f32
    %90 = vector.broadcast %cst_33 : f32 to vector<1x8xf32>
    %91 = arith.mulf %90, %85 : vector<1x8xf32>
    %cst_34 = arith.constant -0.213668063 : f32
    %92 = vector.broadcast %cst_34 : f32 to vector<1x8xf32>
    %93 = arith.subf %92, %91 : vector<1x8xf32>
    %cst_35 = arith.constant 0.893333315 : f32
    %94 = vector.broadcast %cst_35 : f32 to vector<1x8xf32>
    %95 = arith.mulf %94, %89 : vector<1x8xf32>
    %96 = arith.subf %93, %95 : vector<1x8xf32>
    %cst_36 = arith.constant 0.829065561 : f32
    %97 = vector.broadcast %cst_36 : f32 to vector<1x8xf32>
    %98 = arith.subf %97, %81 : vector<1x8xf32>
    %cst_37 = arith.constant 0.555555582 : f32
    %99 = vector.broadcast %cst_37 : f32 to vector<1x8xf32>
    %100 = arith.mulf %99, %98 : vector<1x8xf32>
    %101 = arith.subf %96, %100 : vector<1x8xf32>
    %c8_i32 = arith.constant 8 : i32
    %102 = arith.muli %arg0, %c8_i32 : i32
    %103 = tpu.iota {dimensions = array<i32: 1>} : vector<1x8xi32>
    %104 = vector.broadcast %102 : i32 to vector<1x8xi32>
    %105 = arith.addi %104, %103 : vector<1x8xi32>
    %c8_i32_38 = arith.constant 8 : i32
    %106 = vector.broadcast %c8_i32_38 : i32 to vector<1x8xi32>
    %107 = arith.cmpi slt, %105, %106 : vector<1x8xi32>
    %cst_39 = arith.constant 0.000000e+00 : f32
    %108 = vector.broadcast %cst_39 : f32 to vector<1x8xf32>
    %109 = arith.select %107, %101, %108 : vector<1x8xi1>, vector<1x8xf32>
    %c0_40 = arith.constant 0 : index
    %c0_41 = arith.constant 0 : index
    %110 = vector.load %arg3[%c0_40, %c0_41] : memref<1x8xf32, #tpu.memory_space<vmem>>, vector<1x8xf32>
    tpu.vector_store %arg3[%c0_40, %c0_41], %109 {strides = array<i32>} : memref<1x8xf32, #tpu.memory_space<vmem>>, vector<1x8xf32>,
    return
  }
  func.func @transform_0(%arg0: i32) -> (i32, i32) {
    %c0_i32 = arith.constant 0 : i32
    %c0_i32_0 = arith.constant 0 : i32
    return %c0_i32, %arg0 : i32, i32
  }
  func.func @transform_1(%arg0: i32) -> (i32, i32) {
    %c0_i32 = arith.constant 0 : i32
    %c0_i32_0 = arith.constant 0 : i32
    return %c0_i32, %arg0 : i32, i32
  }
  func.func @transform_2(%arg0: i32) -> (i32, i32) {
    %c0_i32 = arith.constant 0 : i32
    %c0_i32_0 = arith.constant 0 : i32
    return %c0_i32, %arg0 : i32, i32
  }
}

</mosaic_0001>

<bundles_post_ra>
// kernel: tpu_custom_call.1
= control target key start
LH: loop header
LB: loop body
LE: loop exit
PB: predicated region body
PF: predicated region fallthrough
CT: control target
= control target key end

     0   :  { %7 = vsyncpa [#allocation3], 0  ;;  %vm15_vm0 = vcmask 64512   ;;  %vm205_vm4 = vcmask 57344   ;;  %s373_s0 = inlined_call_operand.vmem [shape: f32[16,8], index: 0, kind: input, shape index: {}]   ;;  %s374_s1 = inlined_call_operand.vmem [shape: s32[1,8], index: 1, kind: input, shape index: {}]   ;;  %s375_s2 = inlined_call_operand.hbm [shape: f32[1,8], index: 2, kind: output, shape index: {}]  }
   0x1   :  { %v313_v0 = vld [vmem:[%s373_s0] sm:$0xff]  ;;  %v318_v1 = vld [vmem:[%s373_s0 + $0x8] sm:$0xff] }
   0x2   :  { %v16_v2 = vsel %vm15_vm0, %v313_v0, -inf  ;;  %v17_v3 = vsel %vm15_vm0, %v318_v1, -inf }
   0x3   :  { %v18_v4 = vmax.f32 %v16_v2, %v17_v3 }
   0x5   :  { %v19_v5 = vrot.slane %v18_v4, 4 }
   0x7   :  { %v20_v6 = vmax.f32 %v18_v4, %v19_v5 }
   0x9   :  { %v21_v7 = vrot.slane %v20_v6, 2 }
   0xb   :  { %v22_v8 = vmax.f32 %v20_v6, %v21_v7 }
   0xd   :  { %v23_v9 = vrot.slane %v22_v8, 1 }
   0xf   :  { %v324_v10 = vmax.f32 %v22_v8, %v23_v9 }
  0x11   :  { %v328_v11 = vsub.f32 %v313_v0, %v324_v10  ;;  %v332_v12 = vsub.f32 %v318_v1, %v324_v10 }
  0x13   :  { %v27_v13 = vsub.f32 1.0, %v328_v11  ;;  %v28_v14 = vsub.f32 1.0, %v332_v12 }
  0x15   :  { %226 = vrcp.f32 %v27_v13 }
  0x16   :  { %228 = vrcp.f32 %v28_v14 }
  0x22   :  { %v227_v15 = vpop.eup %226 }
  0x23   :  { %v229_v16 = vpop.eup %228  ;;  %v31_v17 = vsel %vm15_vm0, %v227_v15, 0.0 }
  0x24   :  { %v32_v18 = vsel %vm15_vm0, %v229_v16, 0.0 }
  0x25   :  { %v33_v19 = vadd.f32 %v32_v18, %v31_v17 }
  0x27   :  { %v34_v20 = vrot.slane %v33_v19, 4 }
  0x29   :  { %v35_v21 = vadd.f32 %v34_v20, %v33_v19 }
  0x2b   :  { %v36_v22 = vrot.slane %v35_v21, 2 }
  0x2d   :  { %v37_v23 = vadd.f32 %v36_v22, %v35_v21 }
  0x2f   :  { %v38_v24 = vrot.slane %v37_v23, 1 }
  0x31   :  { %v39_v25 = vadd.f32 %v38_v24, %v37_v23 }
  0x33   :  { %230 = vrcp.f32 %v39_v25 }
  0x40   :  { %v231_v26 = vpop.eup %230 }
  0x41   :  { %v42_v27 = vmul.f32 %v231_v26, %v328_v11  ;;  %v43_v28 = vmul.f32 %v231_v26, %v332_v12 }
  0x43   :  { %v44_v29 = vsub.f32 1.0, %v42_v27  ;;  %v45_v30 = vsub.f32 1.0, %v43_v28 }
  0x45   :  { %232 = vrcp.f32 %v44_v29 }
  0x46   :  { %234 = vrcp.f32 %v45_v30 }
  0x52   :  { %v233_v31 = vpop.eup %232 }
  0x53   :  { %v235_v32 = vpop.eup %234  ;;  %v48_v33 = vsel %vm15_vm0, %v233_v31, 0.0 }
  0x54   :  { %v49_v34 = vsel %vm15_vm0, %v235_v32, 0.0 }
  0x55   :  { %v50_v35 = vadd.f32 %v49_v34, %v48_v33 }
  0x57   :  { %v51_v36 = vrot.slane %v50_v35, 4 }
  0x59   :  { %v52_v37 = vadd.f32 %v51_v36, %v50_v35 }
  0x5b   :  { %v53_v38 = vrot.slane %v52_v37, 2 }
  0x5d   :  { %v54_v39 = vadd.f32 %v53_v38, %v52_v37 }
  0x5f   :  { %v55_v40 = vrot.slane %v54_v39, 1 }
  0x61   :  { %v56_v41 = vadd.f32 %v55_v40, %v54_v39 }
  0x63   :  { %236 = vrcp.f32 %v56_v41 }
  0x70   :  { %v237_v42 = vpop.eup %236 }
  0x71   :  { %v59_v43 = vmul.f32 %v237_v42, %v328_v11  ;;  %v60_v44 = vmul.f32 %v237_v42, %v332_v12 }
  0x73   :  { %v61_v45 = vsub.f32 1.0, %v59_v43  ;;  %v62_v46 = vsub.f32 1.0, %v60_v44 }
  0x75   :  { %238 = vrcp.f32 %v61_v45 }
  0x76   :  { %240 = vrcp.f32 %v62_v46 }
  0x82   :  { %v239_v47 = vpop.eup %238 }
  0x83   :  { %v241_v48 = vpop.eup %240  ;;  %v65_v49 = vsel %vm15_vm0, %v239_v47, 0.0 }
  0x84   :  { %v66_v50 = vsel %vm15_vm0, %v241_v48, 0.0 }
  0x85   :  { %v67_v51 = vadd.f32 %v66_v50, %v65_v49 }
  0x87   :  { %v68_v52 = vrot.slane %v67_v51, 4 }
  0x89   :  { %v69_v53 = vadd.f32 %v68_v52, %v67_v51 }
  0x8b   :  { %v70_v54 = vrot.slane %v69_v53, 2 }
  0x8d   :  { %v71_v55 = vadd.f32 %v70_v54, %v69_v53 }
  0x8f   :  { %v72_v56 = vrot.slane %v71_v55, 1 }
  0x91   :  { %v73_v57 = vadd.f32 %v72_v56, %v71_v55 }
  0x93   :  { %242 = vrcp.f32 %v73_v57 }
  0xa0   :  { %v243_v58 = vpop.eup %242 }
  0xa1   :  { %v76_v59 = vmul.f32 %v243_v58, %v328_v11  ;;  %v77_v60 = vmul.f32 %v243_v58, %v332_v12 }
  0xa3   :  { %v78_v61 = vsub.f32 1.0, %v76_v59  ;;  %v79_v62 = vsub.f32 1.0, %v77_v60 }
  0xa5   :  { %244 = vrcp.f32 %v78_v61 }
  0xa6   :  { %246 = vrcp.f32 %v79_v62  ;;  %v222_v62 = vld [vmem:[%s374_s1] ss:$0 sm:$0xff]  ;;  %s294_s1 = smov [#allocation2]  }
  0xa7   :  { %s213_s14 = sshll.u32 %s294_s1, 4  ;;  %s214_s14 = int_to_ptr.vmem [resolvable:$true] %s213_s14 }
  0xa8   :  { %s272_s15 = scalar_lea.vmem %s214_s14, 16  ;;  %s276_s16 = scalar_lea.vmem %s214_s14, 32 }
  0xa9   :  { %p273_p0 = scmp.ne.s32.totalorder %s214_s14, %s272_s15  ;;  %p277_p1 = scmp.lt.s32.totalorder %s214_s14, %s214_s14 }
  0xaa   :  { %p278_p2 = scmp.lt.s32.totalorder %s276_s16, %s272_s15 }
  0xac   :  { %p279_p3 = por %p278_p2, %p277_p1 }
  0xae   :  { %p280_p4 = pnand %p279_p3, %p273_p0 }
  0xb2   :  { %v245_v63 = vpop.eup %244 }
  0xb3   :  { %v247_v2 = vpop.eup %246  ;;  %v82_v3 = vsel %vm15_vm0, %v245_v63, 0.0 }
  0xb4   :  { %v83_v4 = vsel %vm15_vm0, %v247_v2, 0.0 }
  0xb5   :  { %v84_v5 = vadd.f32 %v83_v4, %v82_v3 }
  0xb7   :  { %v85_v6 = vrot.slane %v84_v5, 4 }
  0xb9   :  { %v86_v7 = vadd.f32 %v85_v6, %v84_v5 }
  0xbb   :  { %v87_v8 = vrot.slane %v86_v7, 2 }
  0xbd   :  { %v88_v9 = vadd.f32 %v87_v8, %v86_v7 }
  0xbf   :  { %v89_v13 = vrot.slane %v88_v9, 1 }
  0xc1   :  { %v90_v14 = vadd.f32 %v89_v13, %v88_v9 }
  0xc3   :  { %248 = vrcp.f32 %v90_v14 }
  0xd0   :  { %v249_v15 = vpop.eup %248 }
  0xd1   :  { %v93_v16 = vmul.f32 %v249_v15, %v328_v11  ;;  %v94_v17 = vmul.f32 %v249_v15, %v332_v12 }
  0xd3   :  { %v95_v18 = vsub.f32 1.0, %v93_v16  ;;  %v96_v19 = vsub.f32 1.0, %v94_v17 }
  0xd5   :  { %250 = vrcp.f32 %v95_v18 }
  0xd6   :  { %252 = vrcp.f32 %v96_v19 }
  0xe2   :  { %v251_v20 = vpop.eup %250 }
  0xe3   :  { %v253_v21 = vpop.eup %252  ;;  %v99_v22 = vsel %vm15_vm0, %v251_v20, 0.0 }
  0xe4   :  { %v100_v23 = vsel %vm15_vm0, %v253_v21, 0.0 }
  0xe5   :  { %v101_v24 = vadd.f32 %v100_v23, %v99_v22 }
  0xe7   :  { %v102_v25 = vrot.slane %v101_v24, 4 }
  0xe9   :  { %v103_v26 = vadd.f32 %v102_v25, %v101_v24 }
  0xeb   :  { %v104_v27 = vrot.slane %v103_v26, 2 }
  0xed   :  { %v105_v28 = vadd.f32 %v104_v27, %v103_v26 }
  0xef   :  { %v106_v29 = vrot.slane %v105_v28, 1 }
  0xf1   :  { %v107_v30 = vadd.f32 %v106_v29, %v105_v28 }
  0xf3   :  { %254 = vrcp.f32 %v107_v30 }
 0x100   :  { %v255_v31 = vpop.eup %254 }
 0x101   :  { %v110_v32 = vmul.f32 %v255_v31, %v328_v11  ;;  %v111_v33 = vmul.f32 %v255_v31, %v332_v12 }
 0x103   :  { %v112_v34 = vsub.f32 1.0, %v110_v32  ;;  %v113_v35 = vsub.f32 1.0, %v111_v33 }
 0x105   :  { %256 = vrcp.f32 %v112_v34 }
 0x106   :  { %258 = vrcp.f32 %v113_v35 }
 0x112   :  { %v257_v36 = vpop.eup %256 }
 0x113   :  { %v259_v37 = vpop.eup %258  ;;  %v118_v38 = vsel %vm15_vm0, %v257_v36, 0.0 }
 0x114   :  { %v119_v39 = vsel %vm15_vm0, %v259_v37, 0.0 }
 0x115   :  { %v120_v40 = vadd.f32 %v119_v39, %v118_v38 }
 0x117   :  { %v121_v41 = vrot.slane %v120_v40, 4 }
 0x119   :  { %v122_v42 = vadd.f32 %v121_v41, %v120_v40 }
 0x11b   :  { %v123_v43 = vrot.slane %v122_v42, 2 }
 0x11d   :  { %v124_v44 = vadd.f32 %v123_v43, %v122_v42 }
 0x11f   :  { %v125_v45 = vrot.slane %v124_v44, 1 }
 0x121   :  { %v126_v46 = vadd.f32 %v125_v45, %v124_v44 }
 0x123   :  { %v221_v11 = vadd.f32 -1.0, %v126_v46 }
 0x125   :  { %v128_v12 = vadd.f32 %v221_v11, %v324_v10 }
 0x127   :  { %v129_v47 = vsub.f32 %v313_v0, %v128_v12  ;;  %v130_v48 = vsub.f32 %v318_v1, %v128_v12  ;;  %v149_v0 = vlaneseq }
 0x129   :  { %v131_v49 = vsub.f32 1.0, %v129_v47  ;;  %v132_v50 = vsub.f32 1.0, %v130_v48  ;;  %v150_v1 = vshrl.u32 %v149_v0, 7  ;;  %v200_v45 = vand.u32 127, %v149_v0 }
 0x12b   :  { %260 = vlog2.f32 %v131_v49  ;;  %v151_v63 = vadd.s32 8, %v150_v1  ;;  %vm156_vm1 = vcmp.eq.s32.totalorder %v150_v1, %v222_v62  ;;  %vm203_vm3 = vcmp.lt.s32.totalorder %v200_v45, 8 }
 0x12c   :  { %262 = vlog2.f32 %v132_v50 }
 0x12d   :  { %vm157_vm2 = vcmp.eq.s32.totalorder %v151_v63, %v222_v62 }
 0x138   :  { %v261_v51 = vpop.eup %260 }
 0x139   :  { %v263_v52 = vpop.eup %262  ;;  %v134_v53 = vmul.f32 0.6931472, %v261_v51 }
 0x13a   :  { %v136_v54 = vmul.f32 0.6931472, %v263_v52 }
 0x13b   :  { %v137_v55 = vmul.f32 -0.8, %v134_v53  ;;  %v143_v56 = vmul.f32 -1.8, %v134_v53 }
 0x13c   :  { %v138_v57 = vmul.f32 -0.8, %v136_v54  ;;  %v144_v58 = vmul.f32 -1.8, %v136_v54 }
 0x13d   :  { %v139_v59 = vmul.f32 1.442695, %v137_v55  ;;  %v145_v60 = vmul.f32 1.442695, %v143_v56 }
 0x13e   :  { %v141_v61 = vmul.f32 1.442695, %v138_v57  ;;  %v147_v10 = vmul.f32 1.442695, %v144_v58 }
 0x13f   :  { %264 = vpow2.f32 %v139_v59 }
 0x140   :  { %266 = vpow2.f32 %v141_v61 }
 0x141   :  { %268 = vpow2.f32 %v145_v60 }
 0x142   :  { %270 = vpow2.f32 %v147_v10 }
 0x14c   :  { %v265_v2 = vpop.eup %264 }
 0x14d   :  { %v267_v3 = vpop.eup %266  ;;  %v158_v4 = vsel %vm15_vm0, %v265_v2, 0.0  ;;  %v167_v5 = vsel %vm156_vm1, %v265_v2, 0.0 }
 0x14e   :  { %v269_v6 = vpop.eup %268  ;;  %v159_v7 = vsel %vm15_vm0, %v267_v3, 0.0  ;;  %v168_v8 = vsel %vm157_vm2, %v267_v3, 0.0  ;;  %v169_v9 = vsel %vm15_vm0, %v167_v5, 0.0 }
 0x14f   :  { %v271_v13 = vpop.eup %270  ;;  %v160_v14 = vadd.f32 %v159_v7, %v158_v4  ;;  %v170_v15 = vsel %vm15_vm0, %v168_v8, 0.0  ;;  %v178_v16 = vsel %vm15_vm0, %v269_v6, 0.0 }
 0x150   :  { %v171_v17 = vadd.f32 %v170_v15, %v169_v9  ;;  %v179_v18 = vsel %vm15_vm0, %v271_v13, 0.0 }
 0x151   :  { %v161_v19 = vrot.slane %v160_v14, 4  ;;  %v180_v20 = vadd.f32 %v179_v18, %v178_v16 }
 0x152   :  { %v172_v21 = vrot.slane %v171_v17, 4 }
 0x153   :  { %v162_v22 = vadd.f32 %v161_v19, %v160_v14  ;;  %v181_v23 = vrot.slane %v180_v20, 4 }
 0x154   :  { %v173_v24 = vadd.f32 %v172_v21, %v171_v17 }
 0x155   :  { %v163_v25 = vrot.slane %v162_v22, 2  ;;  %v182_v26 = vadd.f32 %v181_v23, %v180_v20 }
 0x156   :  { %v174_v27 = vrot.slane %v173_v24, 2 }
 0x157   :  { %v164_v28 = vadd.f32 %v163_v25, %v162_v22  ;;  %v183_v29 = vrot.slane %v182_v26, 2 }
 0x158   :  { %v175_v30 = vadd.f32 %v174_v27, %v173_v24 }
 0x159   :  { %v165_v31 = vrot.slane %v164_v28, 1  ;;  %v184_v32 = vadd.f32 %v183_v29, %v182_v26 }
 0x15a   :  { %v176_v33 = vrot.slane %v175_v30, 1 }
 0x15b   :  { %v166_v34 = vadd.f32 %v165_v31, %v164_v28  ;;  %v185_v35 = vrot.slane %v184_v32, 1 }
 0x15c   :  { %v177_v36 = vadd.f32 %v176_v33, %v175_v30 }
 0x15d   :  { %v186_v37 = vadd.f32 %v185_v35, %v184_v32  ;;  %v223_v38 = vadd.f32 -16.0, %v166_v34 }
 0x15e   :  { %v224_v39 = vadd.f32 -1.0, %v177_v36 }
 0x15f   :  { %v188_v40 = vmul.f32 1.25, %v223_v38  ;;  %v195_v41 = vsub.f32 0.82906556, %v186_v37 }
 0x160   :  { %v190_v42 = vmul.f32 1.25, %v224_v39 }
 0x161   :  { %v191_v43 = vmul.f32 0.006666667, %v188_v40  ;;  %v196_v11 = vmul.f32 0.5555556, %v195_v41 }
 0x162   :  { %v193_v44 = vmul.f32 0.8933333, %v190_v42 }
 0x163   :  { %v192_v46 = vsub.f32 -0.21366806, %v191_v43 }
 0x165   :  { %v194_v12 = vsub.f32 %v192_v46, %v193_v44 }
 0x167   :  { %v197_v47 = vsub.f32 %v194_v12, %v196_v11 }
 0x169   :  { %v204_v48 = vsel %vm203_vm3, %v197_v47, 0.0 }
 0x16a   :  { %206 = vst.msk [vmem:[#allocation2] sm:$0x1] %vm205_vm4, %v204_v48 }
 0x16b   :  { %283 = shalt.err (!%p280_p4)
}
 0x16c   :  { %216 = dma.vmem_to_hbm [thread:$0]  %s214_s14, 16, %s375_s2, [#allocation3]  }
 0x16d   :  { %292 = dma.done.wait [#allocation3], 16  }
 0x16e   :  { %293 = vsyncadd [#allocation3], 4294967280 }
 0x16f   :  { %220 = vsyncpa [#allocation3], 1 }

</bundles_post_ra>
